<compile_context>
chip_gen: v7x
topology: tpu7x:2x2x1
jax: 0.10.0
libtpu: 0.0.40
codegen_flags: <defaults>
</compile_context>

<pallas_src>
import jax
import jax.numpy as jnp
from jax.experimental import pallas as pl
from jax.experimental.pallas import tpu as pltpu


def ffn_kernel(x_ref, w1_ref, b1_ref, w2_ref, b2_ref, o_ref, acc_ref):
    # x_ref: (TM, d_model)   w1_ref: (d_model, TK)   b1_ref: (1, TK)
    # w2_ref: (TK, d_model)  b2_ref: (1, d_model)    o_ref/acc_ref: (TM, d_model)
    k = pl.program_id(1)

    @pl.when(k == 0)
    def _init():
        # Fold the second bias into the accumulator init (no per-k VPU add).
        acc_ref[...] = jnp.broadcast_to(
            b2_ref[...].astype(jnp.float32), acc_ref.shape)

    # First GEMM over the current d_ff slice + bias + ReLU.
    h = jnp.dot(x_ref[...], w1_ref[...],
                preferred_element_type=jnp.float32) + b1_ref[...]
    h = jnp.maximum(h, 0.0)
    # TODO(synk): training-mode dropout (pltpu.prng_seed + stateful_bernoulli)
    # would be applied to `h` here; eval-mode nn.Dropout is identity.

    # Second GEMM: cast the intermediate back to the input dtype (native MXU
    # rate for bf16 models), accumulate in f32.
    acc_ref[...] += jnp.dot(h.astype(x_ref.dtype), w2_ref[...],
                            preferred_element_type=jnp.float32)

    @pl.when(k == pl.num_programs(1) - 1)
    def _store():
        o_ref[...] = acc_ref[...].astype(o_ref.dtype)


def _round_up(x, m):
    return ((x + m - 1) // m) * m


def _pick_tm(n_tokens, dtype, target=256):
    sub = 16 if dtype == jnp.bfloat16 else 8
    if n_tokens <= target:
        return _round_up(n_tokens, sub)
    return _round_up(target, sub)


def _pick_tk(d_ff, target=512):
    # Full-extent blocks are always legal; otherwise use a lane-dense
    # (multiple-of-128) divisor of d_ff.
    if d_ff <= target or d_ff % 128 != 0:
        return d_ff
    tk = 128
    for cand in range(128, target + 1, 128):
        if d_ff % cand == 0:
            tk = cand
    return tk


def feed_forward_block(x, w1, b1, w2, b2, *, tm=None, tk=None):
    """x: (..., d_model).  w1: (d_model, d_ff), b1: (d_ff,),
    w2: (d_ff, d_model), b2: (d_model,)."""
    orig_shape = x.shape
    d_model = orig_shape[-1]
    d_ff = w1.shape[1]
    x2d = x.reshape(-1, d_model)
    n_tokens = x2d.shape[0]

    if tm is None:
        tm = _pick_tm(n_tokens, x.dtype)
    sub = 16 if x.dtype == jnp.bfloat16 else 8
    assert tm % sub == 0, f"tm must be a multiple of {sub} sublanes"
    if tk is None:
        tk = _pick_tk(d_ff)
    assert d_ff % tk == 0 and (tk == d_ff or tk % 128 == 0), "bad d_ff tile"

    # Pad the token axis so it divides evenly into tm-row tiles.
    n_pad = _round_up(n_tokens, tm)
    if n_pad != n_tokens:
        x2d = jnp.pad(x2d, ((0, n_pad - n_tokens), (0, 0)))

    b1_2d = b1.reshape(1, d_ff)
    b2_2d = b2.reshape(1, d_model)

    grid = (n_pad // tm, d_ff // tk)

    flops = 4 * n_pad * d_model * d_ff
    bytes_accessed = (
        x2d.size * x2d.dtype.itemsize                     # x in
        + n_pad * d_model * x2d.dtype.itemsize            # y out
        + (w1.size + w2.size) * w1.dtype.itemsize         # weights
        + (b1.size + b2.size) * b1.dtype.itemsize)        # biases

    out2d = pl.pallas_call(
        ffn_kernel,
        out_shape=jax.ShapeDtypeStruct((n_pad, d_model), x.dtype),
        grid_spec=pltpu.PrefetchScalarGridSpec(
            num_scalar_prefetch=0,
            grid=grid,
            in_specs=[
                pl.BlockSpec((tm, d_model), lambda i, k: (i, 0)),   # x token tile
                pl.BlockSpec((d_model, tk), lambda i, k: (0, k)),   # W1 d_ff slice
                pl.BlockSpec((1, tk), lambda i, k: (0, k)),         # b1 slice
                pl.BlockSpec((tk, d_model), lambda i, k: (k, 0)),   # W2 d_ff slice
                pl.BlockSpec((1, d_model), lambda i, k: (0, 0)),    # b2
            ],
            out_specs=pl.BlockSpec((tm, d_model), lambda i, k: (i, 0)),
            scratch_shapes=[pltpu.VMEM((tm, d_model), jnp.float32)],
        ),
        compiler_params=pltpu.CompilerParams(
            dimension_semantics=("parallel", "arbitrary"),
            vmem_limit_bytes=64 * 1024 * 1024,
        ),
        cost_estimate=pl.CostEstimate(
            flops=flops, transcendentals=0, bytes_accessed=bytes_accessed),
    )(x2d, w1, b1_2d, w2, b2_2d)

    if n_pad != n_tokens:
        out2d = out2d[:n_tokens]
    return out2d.reshape(orig_shape)


def init_params(key, d_model, d_ff, dtype=jnp.float32):
    """Deterministic init mirroring nn.Linear's uniform(-1/sqrt(fan_in), +)."""
    k1, k2, k3, k4 = jax.random.split(key, 4)
    lim1 = 1.0 / (d_model ** 0.5)
    lim2 = 1.0 / (d_ff ** 0.5)
    # Stored pre-transposed relative to PyTorch: W1 is (d_model, d_ff).
    w1 = jax.random.uniform(k1, (d_model, d_ff), dtype, -lim1, lim1)
    b1 = jax.random.uniform(k2, (d_ff,), dtype, -lim1, lim1)
    w2 = jax.random.uniform(k3, (d_ff, d_model), dtype, -lim2, lim2)
    b2 = jax.random.uniform(k4, (d_model,), dtype, -lim2, lim2)
    return w1, b1, w2, b2


if __name__ == "__main__":
    batch, seq, d_model, d_ff = 2, 8, 128, 256
    key = jax.random.PRNGKey(0)
    kx, kp = jax.random.split(key)
    x = jax.random.normal(kx, (batch, seq, d_model), jnp.float32)
    w1, b1, w2, b2 = init_params(kp, d_model, d_ff)

    # tm=8 / tk=128 exercise both grid axes (token-parallel tiles and the d_ff
    # reduction with the accumulator) even at this tiny demo size; at real
    # sizes the auto-picked tiles (tm~256, tk~512) are used.
    y = feed_forward_block(x, w1, b1, w2, b2, tm=8, tk=128)
    y = jax.block_until_ready(y)

    # Pure-JAX reference (dropout is identity in eval mode).
    ref = jnp.maximum(x @ w1 + b1, 0.0) @ w2 + b2
    assert y.shape == x.shape
    assert jnp.allclose(y, ref, atol=1e-4, rtol=1e-4), float(
        jnp.max(jnp.abs(y - ref)))
    print("KERNEL_OK")
</pallas_src>

<mosaic_0001>
module attributes {stable_mosaic.version = 11 : i64} {
  func.func @ffn_kernel(%arg0: i32, %arg1: i32, %arg2: memref<8x128xf32, #tpu.memory_space<vmem>>, %arg3: memref<128x128xf32, #tpu.memory_space<vmem>>, %arg4: memref<1x128xf32, #tpu.memory_space<vmem>>, %arg5: memref<128x128xf32, #tpu.memory_space<vmem>>, %arg6: memref<1x128xf32, #tpu.memory_space<vmem>>, %arg7: memref<8x128xf32, #tpu.memory_space<vmem>>, %arg8: memref<8x128xf32, #tpu.memory_space<vmem>>) attributes {dimension_semantics = [#tpu.dimension_semantics<parallel>, #tpu.dimension_semantics<arbitrary>], iteration_bounds = array<i64: 2, 2>, scalar_prefetch = 0 : i64, scratch_operands = 1 : i64, tpu.core_type = #tpu.core_type<tc>, window_params = [{transform_indices = @transform_0, window_bounds = array<i64: 8, 128>}, {transform_indices = @transform_1, window_bounds = array<i64: 128, 128>}, {transform_indices = @transform_2, window_bounds = array<i64: 1, 128>}, {transform_indices = @transform_3, window_bounds = array<i64: 128, 128>}, {pipeline_mode = #tpu.pipeline_mode<synchronous>, transform_indices = @transform_4, window_bounds = array<i64: 1, 128>}, {transform_indices = @transform_5, window_bounds = array<i64: 8, 128>}]} {
    %c0_i32 = arith.constant 0 : i32
    %0 = arith.cmpi eq, %arg1, %c0_i32 : i32
    %1 = arith.extui %0 : i1 to i32
    %c0_i32_0 = arith.constant 0 : i32
    %2 = arith.cmpi ne, %1, %c0_i32_0 : i32
    scf.if %2 {
      %c0_15 = arith.constant 0 : index
      %c0_16 = arith.constant 0 : index
      %19 = vector.load %arg6[%c0_15, %c0_16] : memref<1x128xf32, #tpu.memory_space<vmem>>, vector<1x128xf32>
      %20 = vector.shape_cast %19 : vector<1x128xf32> to vector<1x128xf32>
      %21 = vector.broadcast %20 : vector<1x128xf32> to vector<8x128xf32>
      %c0_17 = arith.constant 0 : index
      %c0_18 = arith.constant 0 : index
      %22 = vector.load %arg8[%c0_17, %c0_18] : memref<8x128xf32, #tpu.memory_space<vmem>>, vector<8x128xf32>
      tpu.vector_store %arg8[%c0_17, %c0_18], %21 {strides = array<i32>} : memref<8x128xf32, #tpu.memory_space<vmem>>, vector<8x128xf32>,
    } else {
    }
    %c0 = arith.constant 0 : index
    %c0_1 = arith.constant 0 : index
    %3 = vector.load %arg2[%c0, %c0_1] : memref<8x128xf32, #tpu.memory_space<vmem>>, vector<8x128xf32>
    %c0_2 = arith.constant 0 : index
    %c0_3 = arith.constant 0 : index
    %4 = vector.load %arg3[%c0_2, %c0_3] : memref<128x128xf32, #tpu.memory_space<vmem>>, vector<128x128xf32>
    %cst = arith.constant dense<0.000000e+00> : vector<8x128xf32>
    %5 = tpu.matmul %3, %4, %cst {dimension_numbers = #tpu.dot_dimension_numbers<[1], [0], [0], [1], [0, 0, 1, 1], [], []>} : vector<8x128xf32>, vector<128x128xf32>, vector<8x128xf32> -> vector<8x128xf32>
    %c0_4 = arith.constant 0 : index
    %c0_5 = arith.constant 0 : index
    %6 = vector.load %arg4[%c0_4, %c0_5] : memref<1x128xf32, #tpu.memory_space<vmem>>, vector<1x128xf32>
    %7 = vector.broadcast %6 : vector<1x128xf32> to vector<8x128xf32>
    %8 = arith.addf %5, %7 : vector<8x128xf32>
    %cst_6 = arith.constant 0.000000e+00 : f32
    %9 = vector.broadcast %cst_6 : f32 to vector<8x128xf32>
    %10 = arith.maximumf %8, %9 : vector<8x128xf32>
    %c0_7 = arith.constant 0 : index
    %c0_8 = arith.constant 0 : index
    %11 = vector.load %arg8[%c0_7, %c0_8] : memref<8x128xf32, #tpu.memory_space<vmem>>, vector<8x128xf32>
    %c0_9 = arith.constant 0 : index
    %c0_10 = arith.constant 0 : index
    %12 = vector.load %arg5[%c0_9, %c0_10] : memref<128x128xf32, #tpu.memory_space<vmem>>, vector<128x128xf32>
    %cst_11 = arith.constant dense<0.000000e+00> : vector<8x128xf32>
    %13 = tpu.matmul %10, %12, %cst_11 {dimension_numbers = #tpu.dot_dimension_numbers<[1], [0], [0], [1], [0, 0, 1, 1], [], []>} : vector<8x128xf32>, vector<128x128xf32>, vector<8x128xf32> -> vector<8x128xf32>
    %14 = arith.addf %11, %13 : vector<8x128xf32>
    %c0_12 = arith.constant 0 : index
    %c0_13 = arith.constant 0 : index
    %15 = vector.load %arg8[%c0_12, %c0_13] : memref<8x128xf32, #tpu.memory_space<vmem>>, vector<8x128xf32>
    tpu.vector_store %arg8[%c0_12, %c0_13], %14 {strides = array<i32>} : memref<8x128xf32, #tpu.memory_space<vmem>>, vector<8x128xf32>,
    %c1_i32 = arith.constant 1 : i32
    %16 = arith.cmpi eq, %arg1, %c1_i32 : i32
    %17 = arith.extui %16 : i1 to i32
    %c0_i32_14 = arith.constant 0 : i32
    %18 = arith.cmpi ne, %17, %c0_i32_14 : i32
    scf.if %18 {
      %c0_15 = arith.constant 0 : index
      %c0_16 = arith.constant 0 : index
      %19 = vector.load %arg8[%c0_15, %c0_16] : memref<8x128xf32, #tpu.memory_space<vmem>>, vector<8x128xf32>
      %c0_17 = arith.constant 0 : index
      %c0_18 = arith.constant 0 : index
      %20 = vector.load %arg7[%c0_17, %c0_18] : memref<8x128xf32, #tpu.memory_space<vmem>>, vector<8x128xf32>
      tpu.vector_store %arg7[%c0_17, %c0_18], %19 {strides = array<i32>} : memref<8x128xf32, #tpu.memory_space<vmem>>, vector<8x128xf32>,
    } else {
    }
    return
  }
  func.func @transform_0(%arg0: i32, %arg1: i32) -> (i32, i32) {
    %c0_i32 = arith.constant 0 : i32
    %c0_i32_0 = arith.constant 0 : i32
    return %arg0, %c0_i32 : i32, i32
  }
  func.func @transform_1(%arg0: i32, %arg1: i32) -> (i32, i32) {
    %c0_i32 = arith.constant 0 : i32
    %c0_i32_0 = arith.constant 0 : i32
    return %c0_i32, %arg1 : i32, i32
  }
  func.func @transform_2(%arg0: i32, %arg1: i32) -> (i32, i32) {
    %c0_i32 = arith.constant 0 : i32
    %c0_i32_0 = arith.constant 0 : i32
    return %c0_i32, %arg1 : i32, i32
  }
  func.func @transform_3(%arg0: i32, %arg1: i32) -> (i32, i32) {
    %c0_i32 = arith.constant 0 : i32
    %c0_i32_0 = arith.constant 0 : i32
    return %arg1, %c0_i32 : i32, i32
  }
  func.func @transform_4(%arg0: i32, %arg1: i32) -> (i32, i32) {
    %c0_i32 = arith.constant 0 : i32
    %c0_i32_0 = arith.constant 0 : i32
    %c0_i32_1 = arith.constant 0 : i32
    return %c0_i32, %c0_i32_0 : i32, i32
  }
  func.func @transform_5(%arg0: i32, %arg1: i32) -> (i32, i32) {
    %c0_i32 = arith.constant 0 : i32
    %c0_i32_0 = arith.constant 0 : i32
    return %arg0, %c0_i32 : i32, i32
  }
}

</mosaic_0001>

<bundles_post_ra>
// kernel: tpu_custom_call.1
= control target key start
LH: loop header
LB: loop body
LE: loop exit
PB: predicated region body
PF: predicated region fallthrough
CT: control target
= control target key end

     0   :  { %s1855_s0 = inlined_call_operand.hbm [shape: f32[16,128], index: 0, kind: input, shape index: {}]   ;;  %s1856_s1 = inlined_call_operand.hbm [shape: f32[128,256], index: 1, kind: input, shape index: {}]   ;;  %s1857_s2 = inlined_call_operand.hbm [shape: f32[1,256], index: 2, kind: input, shape index: {}]   ;;  %s1858_s3 = inlined_call_operand.hbm [shape: f32[256,128], index: 3, kind: input, shape index: {}]   ;;  %s1859_s4 = inlined_call_operand.hbm [shape: f32[1,128], index: 4, kind: input, shape index: {}]   ;;  %s1860_s5 = inlined_call_operand.hbm [shape: f32[16,128], index: 5, kind: output, shape index: {}]  }
   0x1   :  { %1885 = sst [smem:[#allocation30_spill]] %s1856_s1 }
   0x2   :  { %1886 = sst [smem:[#allocation31_spill]] %s1859_s4 }
   0x3   :  { %1887 = sst [smem:[#allocation32_spill]] %s1860_s5 }
   0x4   :  { %10 = vsyncpa [#allocation4], 0 }
   0x5   :  { %12 = vsyncpa [#allocation4 + $0x1], 0 }
   0x6   :  { %13 = vsyncpa [#allocation7], 0 }
   0x7   :  { %15 = vsyncpa [#allocation7 + $0x1], 0 }
   0x8   :  { %16 = vsyncpa [#allocation10], 0 }
   0x9   :  { %18 = vsyncpa [#allocation10 + $0x1], 0 }
   0xa   :  { %19 = vsyncpa [#allocation5], 0 }
   0xb   :  { %21 = vsyncpa [#allocation5 + $0x1], 0  ;;  %s1384_s18 = smov 0   ;;  %s1386_s19 = smov 0  }
   0xc   :  { %s1388_s20 = smov 0   ;;  %s1390_s21 = smov 0  }
   0xd   :  { %s1392_s22 = smov 0   ;;  %s1394_s23 = smov 0  }
   0xe   :  { %s1396_s24 = smov 0   ;;  %s1398_s25 = smov 0  }
   0xf   :  { %s1400_s26 = smov 0   ;;  %s1402_s27 = smov 0  }
  0x10   :  { %s1404_s28 = smov 0  }
  0x11 LB: > { %1888 = sst [smem:[#allocation18_spill]] %s1304_s19  ;;  %s1438_s29 = sadd.s32 4294967295, %s1340_s28   ;;  %s1340_s28 = sphi %s1404_s28, %s27_s28   ;;  %s1336_s27 = sphi %s1402_s27, %s1946_s27   ;;  %s1332_s26 = sphi %s1400_s26, %s1952_s26   ;;  %s1328_s25 = sphi %s1398_s25, %s1944_s25   ;;  %s1324_s24 = sphi %s1396_s24, %s1951_s24   ;;  %s1320_s23 = sphi %s1394_s23, %s1943_s23   ;;  %s1316_s22 = sphi %s1392_s22, %s1950_s22   ;;  %s1312_s21 = sphi %s1390_s21, %s1949_s21   ;;  %s1308_s20 = sphi %s1388_s20, %s1948_s20   ;;  %s1304_s19 = sphi %s1386_s19, %s1947_s19   ;;  %s1300_s18 = sphi %s1384_s18, %s1941_s18  }
  0x12   : > { %1889 = sst [smem:[#allocation19_spill]] %s1312_s21  ;;  %s745_s30 = sadd.s32 4294967294, %s1340_s28  }
  0x13   : > { %1890 = sst [smem:[#allocation20_spill]] %s1320_s23  ;;  %p1864_p0 = scmp.eq.s32.totalorder %s1340_s28, 0 }
  0x14   : > { %1891 = sst [smem:[#allocation21_spill]] %s1324_s24  ;;  %p59_p1 = scmp.ne.s32.totalorder %s1316_s22, %s1312_s21 }
  0x15   : > { %1892 = sst [smem:[#allocation22_spill]] %s1328_s25  ;;  %p1861_p2 = scmp.eq.s32.totalorder %s1438_s29, 0 }
  0x16   : > { %1893 = sst [smem:[#allocation23_spill]] %s1336_s27  ;;  %p79_p3 = scmp.ne.s32.totalorder %s1308_s20, %s1304_s19 }
  0x17   : > { %1894 = sst [smem:[#allocation24_spill]] %s1438_s29  ;;  %p85_p4 = scmp.ne.s32.totalorder %s1304_s19, %s1300_s18 }
  0x18   : > { %p1451_p5 = por %p1861_p2, %p59_p1  ;;  %p1458_p7 = por %p79_p3, %p1864_p0 }
  0x19   : > { %p1464_p8 = por %p85_p4, %p1861_p2  ;;  %p188_p9 = scmp.eq.s32.totalorder %s745_s30, 3 }
  0x1a   : > { %s1895_s7 = scalar_select %p1451_p5, 1, 0 }
  0x1b   : > { %s1897_s9 = scalar_select %p1464_p8, 1, 0 }
  0x1c   : > { %p746_p10 = scmp.ge.s32.totalorder %s1340_s28, 1  ;;  %p195_p11 = scmp.lt.s32.totalorder %s1340_s28, 5 }
  0x1d   : > { %1898 = sst [smem:[#allocation25_spill]] %s1897_s9  ;;  %p1470_p12 = por %p188_p9, %p59_p1 }
  0x1e   : > { %p1474_p13 = pnand %p746_p10, %p195_p11  ;;  %s1342_s12 = smov [#allocation11]  }
  0x1f   : > { %s1899_s10 = scalar_select %p1470_p12, 1, 0 }
  0x20   : > { %s1901_s11 = scalar_select %p1474_p13, 1, 0 }
  0x21   : > { %1900 = sst [smem:[#allocation26_spill]] %s1899_s10  ;;  %s208_s13 = sshll.u32 %s1342_s12, 4  ;;  %s209_s13 = int_to_ptr.vmem [resolvable:$true] %s208_s13 }
  0x22   : > { %p938_p3 = pneg %p1474_p13  ;;  %p1863_p4 = scmp.lt.s32.totalorder %s1340_s28, 4 }
  0x23   : > { %s1904_s4 = sld [smem:[#allocation31_spill]] }
  0x24   : > { %p1484_p6 = pnand %p938_p3, %p1861_p2  ;;  %p1492_p1 = pnand %p1863_p4, %p1458_p7 }
  0x26   : > { %s1903_s16 = scalar_select %p1492_p1, 1, 0 }
  0x27   : > { %p1060_p10 = pneg %p1484_p6 }
  0x29   : > { %s1058_s30 = scalar_lea.hbm %s1904_s4, 16 }
  0x2a   : > { %p1059_p9 = scmp.ne.s32.totalorder %s1904_s4, %s1058_s30  ;;  %p1065_p2 = scmp.lt.u32.totalorder %s1058_s30, %s1904_s4 }
  0x2c   : > { %p1061_p11 = pnand %p1060_p10, %p1059_p9 }
  0x2e   : > { %p1062_p3 = pneg %p1061_p11 }
  0x30   : > { %p1067_p7 = pnand %p1065_p2, %p1062_p3 }
  0x32   : > { %1070 = shalt.err (!%p1067_p7)
}
  0x33   : > { %s1071_s10 = scalar_lea.vmem %s209_s13, 16  ;;  %s1078_s17 = scalar_lea.vmem %s209_s13, 32 }
  0x34   : > { %p1072_p4 = scmp.ne.s32.totalorder %s209_s13, %s1071_s10  ;;  %p1079_p8 = scmp.lt.s32.totalorder %s209_s13, %s209_s13 }
  0x35   : > { %p1080_p5 = scmp.lt.s32.totalorder %s1078_s17, %s1071_s10 }
  0x36   : > { %p1074_p0 = pnand %p1072_p4, %p1060_p10 }
  0x37   : > { %p1081_p13 = por %p1080_p5, %p1079_p8 }
  0x38   : > { %p1075_p12 = pneg %p1074_p0 }
  0x3a   : > { %p1082_p1 = pnand %p1081_p13, %p1075_p12 }
  0x3c   : > { %1085 = shalt.err (!%p1082_p1)
}
  0x3d   : > { %941 = dma.hbm_to_vmem [thread:$0]  (!%p1484_p6), %s1904_s4, 16, %s209_s13, [#allocation10]  }
  0x3e   : > { %s1869_s14 = sand.u32 1, %s1308_s20   ;;  %s752_s30 = sshll.u32 %s1332_s26, 7 }
  0x3f   : > { %s1516_s12 = sshll.u32 %s1869_s14, 7  ;;  %s1905_s1 = sld [smem:[#allocation30_spill]] }
  0x40   : > { %s241_s15 = scalar_lea.vmem [#allocation6], %s1516_s12  ;;  %s1906_s13 = sand.u32 1, %s1340_s28  }
  0x41   : > { %s247_s6 = sshll.u32 %s241_s15, 4  ;;  %s1528_s18 = scalar_lea.sflag [#allocation7], %s1906_s13  ;;  %s1524_s6 = int_to_ptr.vmem [resolvable:$true] %s247_s6 }
  0x42   : > { %p1907_p2 = scmp.ne.s32.totalorder %s1903_s16, 0 }
  0x44   : > { %p1534_p5 = pneg %p1907_p2 }
  0x45   : > { %s1521_s17 = scalar_lea.hbm %s1905_s1, %s752_s30  ;;  %s1091_s8 = scalar_lea.hbm %s1905_s1, 4096 }
  0x46   : > { %s1086_s4 = scalar_lea.hbm %s1521_s17, 2048  ;;  %p1092_p12 = scmp.lt.u32.totalorder %s1521_s17, %s1905_s1 }
  0x47   : > { %p1087_p0 = scmp.ne.s32.totalorder %s1521_s17, %s1086_s4  ;;  %p1093_p13 = scmp.lt.u32.totalorder %s1091_s8, %s1086_s4 }
  0x48   : > { %p1095_p1 = scmp.lt.u32.totalorder %s1086_s4, %s1521_s17 }
  0x49   : > { %p1089_p6 = pnand %p1534_p5, %p1087_p0  ;;  %p1094_p4 = por %p1093_p13, %p1092_p12 }
  0x4b   : > { %p1090_p8 = pneg %p1089_p6  ;;  %p1096_p9 = por %p1095_p1, %p1094_p4 }
  0x4d   : > { %p1097_p10 = pnand %p1096_p9, %p1090_p8 }
  0x4f   : > { %1100 = shalt.err (!%p1097_p10)
}
  0x50   : > { %s1101_s13 = scalar_lea.vmem %s1524_s6, 2048  ;;  %s1343_s30 = smov [#allocation6]  }
  0x51   : > { %p1102_p11 = scmp.ne.s32.totalorder %s1524_s6, %s1101_s13  ;;  %s1106_s10 = sshll.u32 %s1343_s30, 4  ;;  %s1107_s10 = int_to_ptr.vmem [resolvable:$false] %s1106_s10 }
  0x52   : > { %s1108_s21 = scalar_lea.vmem %s1107_s10, 4096  ;;  %p1109_p0 = scmp.lt.s32.totalorder %s1524_s6, %s1107_s10 }
  0x53   : > { %p1104_p3 = pnand %p1102_p11, %p1534_p5  ;;  %p1110_p6 = scmp.lt.s32.totalorder %s1108_s21, %s1101_s13 }
  0x55   : > { %p1105_p7 = pneg %p1104_p3  ;;  %p1111_p12 = por %p1110_p6, %p1109_p0 }
  0x57   : > { %p1112_p13 = pnand %p1111_p12, %p1105_p7 }
  0x59   : > { %1115 = shalt.err (!%p1112_p13)
}
  0x5a   : > { %s1344_s4 = smov 256   ;;  %s1871_s8 = smov 128  }
  0x5b   : > { %s1872_s15 = smov 8   ;;  %s36_s13 = sadd.s32 1, %s1332_s26 }
  0x5c   : > { %948 = dma.hbm_to_vmem [thread:$0]  (!%p1907_p2), %s1521_s17, 2048, %s1524_s6, %s1528_s18, %s1344_s4, %s1871_s8, %s1872_s15  }
  0x5d   : > { %s39_s30 = sadd.s32 1, %s1336_s27  ;;  %p37_p8 = scmp.ge.s32.totalorder %s36_s13, 2 }
  0x5e   : > { %s46_s10 = sadd.s32 1, %s1320_s23  ;;  %p53_p4 = scmp.ne.s32.totalorder %s1320_s23, %s1316_s22 }
  0x5f   : > { %s219_s21 = sand.u32 1, %s1320_s23   ;;  %s1954_s13 = smov (%p37_p8, %s36_s13), 0 }
  0x60   : > { %1909 = sst [smem:[#allocation27_spill]] %s1954_s13  ;;  %s1956_s30 = smov (!%p37_p8, %s39_s30), %s1336_s27 }
  0x61   : > { %p1910_p1 = scmp.eq.s32.totalorder %s1340_s28, 0  ;;  %s69_s17 = ssub.s32 %s1332_s26, %s1954_s13 }
  0x62   : > { %p41_p10 = scmp.ge.s32.totalorder %s1956_s30, 2  ;;  %p70_p11 = scmp.eq.s32.totalorder %s69_s17, 0 }
  0x63   : > { %p1571_p9 = por %p1910_p1, %p53_p4  ;;  %p1912_p3 = scmp.eq.s32.totalorder %s1438_s29, 3 }
  0x64   : > { %s1958_s30 = smov (%p41_p10, %s1956_s30), 0  ;;  %s1915_s4 = sadd.s32 1, %s1308_s20 }
  0x65   : > { %p1579_p7 = por %p1912_p3, %p53_p4  ;;  %1914 = sst [smem:[#allocation28_spill]] %s1958_s30 }
  0x66   : > { %s1588_s8 = scalar_select %p70_p11, %s1308_s20, %s1915_s4  }
  0x67   : > { %s1913_s6 = scalar_select %p1579_p7, 1, 0 }
  0x68   : > { %s43_s15 = ssub.s32 %s1336_s27, %s1958_s30  ;;  %s749_s5 = sshll.u32 %s219_s21, 3 }
  0x69   : > { %p44_p0 = scmp.eq.s32.totalorder %s43_s15, 0  ;;  %s750_s25 = sshll.u32 %s1336_s27, 7 }
  0x6a   : > { %s223_s13 = scalar_lea.vmem [#allocation3], %s749_s5  ;;  %s1599_s29 = scalar_lea.hbm %s1855_s0, %s750_s25 }
  0x6b   : > { %s230_s24 = sshll.u32 %s223_s13, 4  ;;  %p1917_p6 = scmp.lt.s32.totalorder %s1340_s28, 4  ;;  %s1601_s24 = int_to_ptr.vmem [resolvable:$true] %s230_s24 }
  0x6c   : > { %s1594_s9 = scalar_select %p44_p0, %s1320_s23, %s46_s10  }
  0x6d   : > { %p1607_p12 = pnand %p1917_p6, %p1571_p9  ;;  %s753_s5 = sshll.u32 %s1332_s26, 4 }
  0x6e   : > { %1916 = sst [smem:[#allocation29_spill]] %s1594_s9  ;;  %s1919_s13 = sand.u32 1, %s1308_s20  }
  0x6f   : > { %s1614_s10 = scalar_lea.vmem [#allocation8], %s1919_s13  ;;  %s1620_s17 = scalar_lea.hbm %s1857_s2, %s753_s5 }
  0x70   : > { %s220_s1 = scalar_lea.sflag [#allocation4], %s219_s21  ;;  %s1116_s30 = scalar_lea.hbm %s1599_s29, 128 }
  0x71   : > { %p1117_p13 = scmp.ne.s32.totalorder %s1599_s29, %s1116_s30  ;;  %p1118_p8 = pneg %p1607_p12 }
  0x72   : > { %s1121_s13 = scalar_lea.hbm %s1855_s0, 256  ;;  %p1122_p9 = scmp.lt.u32.totalorder %s1599_s29, %s1855_s0 }
  0x73   : > { %p1119_p4 = pnand %p1118_p8, %p1117_p13  ;;  %p1123_p10 = scmp.lt.u32.totalorder %s1121_s13, %s1116_s30 }
  0x74   : > { %p1125_p3 = scmp.lt.u32.totalorder %s1116_s30, %s1599_s29 }
  0x75   : > { %p1120_p1 = pneg %p1119_p4  ;;  %p1124_p11 = por %p1123_p10, %p1122_p9 }
  0x77   : > { %p1126_p0 = por %p1125_p3, %p1124_p11 }
  0x79   : > { %p1127_p6 = pnand %p1126_p0, %p1120_p1 }
  0x7b   : > { %1130 = shalt.err (!%p1127_p6)
}
  0x7c   : > { %s1131_s21 = scalar_lea.vmem %s1601_s24, 128  ;;  %s1347_s27 = smov [#allocation3]  }
  0x7d   : > { %p1132_p13 = scmp.ne.s32.totalorder %s1601_s24, %s1131_s21  ;;  %s1136_s9 = sshll.u32 %s1347_s27, 4  ;;  %s1137_s9 = int_to_ptr.vmem [resolvable:$false] %s1136_s9 }
  0x7e   : > { %s1138_s23 = scalar_lea.vmem %s1137_s9, 256  ;;  %p1139_p2 = scmp.lt.s32.totalorder %s1601_s24, %s1137_s9 }
  0x7f   : > { %p1134_p4 = pnand %p1132_p13, %p1118_p8  ;;  %p1140_p9 = scmp.lt.s32.totalorder %s1138_s23, %s1131_s21 }
  0x81   : > { %p1135_p7 = pneg %p1134_p4  ;;  %p1141_p10 = por %p1140_p9, %p1139_p2 }
  0x83   : > { %p1142_p11 = pnand %p1141_p10, %p1135_p7 }
  0x85   : > { %1145 = shalt.err (!%p1142_p11)
}
  0x86   : > { %945 = dma.hbm_to_vmem [thread:$0]  (!%p1607_p12), %s1599_s29, 128, %s1601_s24, %s220_s1  }
  0x87   : > { %s1920_s30 = sshll.u32 %s1614_s10, 4  ;;  %s1146_s5 = scalar_lea.hbm %s1620_s17, 16  ;;  %s268_s30 = int_to_ptr.vmem [resolvable:$true] %s1920_s30 }
  0x88   : > { %p1147_p8 = scmp.ne.s32.totalorder %s1620_s17, %s1146_s5  ;;  %s1151_s15 = scalar_lea.hbm %s1857_s2, 32 }
  0x89   : > { %p1152_p7 = scmp.lt.u32.totalorder %s1620_s17, %s1857_s2  ;;  %p1153_p3 = scmp.lt.u32.totalorder %s1151_s15, %s1146_s5 }
  0x8a   : > { %p1149_p1 = pnand %p1147_p8, %p1534_p5  ;;  %p1155_p6 = scmp.lt.u32.totalorder %s1146_s5, %s1620_s17 }
  0x8b   : > { %p1154_p0 = por %p1153_p3, %p1152_p7 }
  0x8c   : > { %p1150_p2 = pneg %p1149_p1 }
  0x8d   : > { %p1156_p13 = por %p1155_p6, %p1154_p0 }
  0x8f   : > { %p1157_p12 = pnand %p1156_p13, %p1150_p2 }
  0x91   : > { %1160 = shalt.err (!%p1157_p12)
}
  0x92   : > { %s1161_s24 = scalar_lea.vmem %s268_s30, 16  ;;  %s1348_s29 = smov [#allocation8]  }
  0x93   : > { %p1162_p4 = scmp.ne.s32.totalorder %s268_s30, %s1161_s24  ;;  %s1166_s10 = sshll.u32 %s1348_s29, 4  ;;  %s1167_s10 = int_to_ptr.vmem [resolvable:$false] %s1166_s10 }
  0x94   : > { %s1168_s1 = scalar_lea.vmem %s1167_s10, 32  ;;  %p1169_p11 = scmp.lt.s32.totalorder %s268_s30, %s1167_s10 }
  0x95   : > { %p1164_p9 = pnand %p1162_p4, %p1534_p5  ;;  %p1170_p8 = scmp.lt.s32.totalorder %s1168_s1, %s1161_s24 }
  0x97   : > { %p1165_p10 = pneg %p1164_p9  ;;  %p1171_p1 = por %p1170_p8, %p1169_p11 }
  0x99   : > { %p1172_p3 = pnand %p1171_p1, %p1165_p10 }
  0x9b   : > { %1175 = shalt.err (!%p1172_p3)
}
  0x9c   : > { %p1921_p7 = scmp.ne.s32.totalorder %s1903_s16, 0  ;;  %s771_s21 = sshll.u32 %s1332_s26, 11 }
  0x9d   : > { %s1671_s23 = scalar_lea.hbm %s1858_s3, %s771_s21  ;;  %s278_s5 = scalar_lea.vmem [#allocation9], %s1516_s12 }
  0x9e   : > { %951 = dma.hbm_to_vmem [thread:$0]  (!%p1921_p7), %s1620_s17, 16, %s268_s30, %s1528_s18  }
  0x9f   : > { %s285_s19 = sshll.u32 %s278_s5, 4  ;;  %s1922_s25 = sand.u32 1, %s1340_s28   ;;  %s1674_s19 = int_to_ptr.vmem [resolvable:$true] %s285_s19 }
  0xa0   : > { %s1678_s15 = scalar_lea.sflag [#allocation10], %s1922_s25  ;;  %s1176_s4 = scalar_lea.hbm %s1671_s23, 2048 }
  0xa1   : > { %p1177_p2 = scmp.ne.s32.totalorder %s1671_s23, %s1176_s4  ;;  %s1181_s30 = scalar_lea.hbm %s1858_s3, 4096 }
  0xa2   : > { %p1182_p13 = scmp.lt.u32.totalorder %s1671_s23, %s1858_s3  ;;  %p1183_p12 = scmp.lt.u32.totalorder %s1181_s30, %s1176_s4 }
  0xa3   : > { %p1179_p0 = pnand %p1177_p2, %p1534_p5  ;;  %p1185_p9 = scmp.lt.u32.totalorder %s1176_s4, %s1671_s23 }
  0xa4   : > { %p1184_p4 = por %p1183_p12, %p1182_p13 }
  0xa5   : > { %p1180_p6 = pneg %p1179_p0 }
  0xa6   : > { %p1186_p10 = por %p1185_p9, %p1184_p4 }
  0xa8   : > { %p1187_p11 = pnand %p1186_p10, %p1180_p6 }
  0xaa   : > { %1190 = shalt.err (!%p1187_p11)
}
  0xab   : > { %s1191_s12 = scalar_lea.vmem %s1674_s19, 2048  ;;  %s1349_s29 = smov [#allocation9]  }
  0xac   : > { %p1192_p8 = scmp.ne.s32.totalorder %s1674_s19, %s1191_s12  ;;  %s1196_s10 = sshll.u32 %s1349_s29, 4  ;;  %s1197_s10 = int_to_ptr.vmem [resolvable:$false] %s1196_s10 }
  0xad   : > { %s1198_s1 = scalar_lea.vmem %s1197_s10, 4096  ;;  %p1199_p2 = scmp.lt.s32.totalorder %s1674_s19, %s1197_s10 }
  0xae   : > { %p1194_p1 = pnand %p1192_p8, %p1534_p5  ;;  %p1200_p0 = scmp.lt.s32.totalorder %s1198_s1, %s1191_s12 }
  0xb0   : > { %p1195_p3 = pneg %p1194_p1  ;;  %p1201_p13 = por %p1200_p0, %p1199_p2 }
  0xb2   : > { %p1202_p12 = pnand %p1201_p13, %p1195_p3 }
  0xb4   : > { %1205 = shalt.err (!%p1202_p12)
}
  0xb5   : > { %s1923_s21 = smov 8   ;;  %s1924_s27 = smov 128  }
  0xb6   : > { %954 = dma.hbm_to_vmem [thread:$0]  (!%p1921_p7), %s1671_s23, 2048, %s1674_s19, %s1678_s15, %s1924_s27, %s1924_s27, %s1923_s21  }
  0xb7   : > { %p1925_p5 = scmp.ne.s32.totalorder %s1901_s11, 0 }
  0xb8   : > { %s1708_s14 = sand.u32 (!%p1925_p5), 1, %s1316_s22   ;;  %p1926_p6 = scmp.ne.s32.totalorder (!%p1925_p5), %s1895_s7, 0 }
  0xb9   : > { %297 = sbr.rel (%p1925_p5) target bundleno = 725 (0x2d5), region = 40  ;;  %s758_s9 = sshll.u32 (!%p1925_p5), %s1708_s14, 3 }
  0xba   : > { %s300_s5 = scalar_lea.sflag (!%p1925_p5), [#allocation4], %s1708_s14  ;;  %s1712_s25 = scalar_lea.vmem (!%p1925_p5), [#allocation3], %s758_s9 }
  0xc0   : > { %1279 = dma.done.wait (%p1926_p6), %s300_s5, 128  }
  0xc1   : > { %1281 = vsyncadd (%p1926_p6), %s300_s5, 4294967168  ;;  %s1927_s16 = sld [smem:[#allocation24_spill]]  ;;  %s1928_s23 = sld [smem:[#allocation18_spill]] }
  0xc2   : > { %s1929_s19 = sld [smem:[#allocation25_spill]] }
  0xc7   : > { %s308_s11 = sand.u32 1, %s1927_s16   ;;  %s310_s15 = sand.u32 1, %s1928_s23  }
  0xc8   : > { %s759_s4 = sshll.u32 %s310_s15, 7  ;;  %s309_s18 = scalar_lea.sflag [#allocation7], %s308_s11 }
  0xc9   : > { %s1720_s17 = scalar_lea.vmem [#allocation6], %s759_s4  ;;  %p1930_p7 = scmp.ne.s32.totalorder %s1929_s19, 0 }
  0xcb   : > { %1283 = dma.done.wait (%p1930_p7), %s309_s18, 2064  }
  0xcc   : > { %1285 = vsyncadd (%p1930_p7), %s309_s18, 4294965232  ;;  %s1726_s30 = scalar_lea.vmem [#allocation8], %s310_s15  ;;  %s326_s13 = scalar_lea.sflag [#allocation10], %s308_s11 }
  0xcd   : > { %s1728_s7 = scalar_lea.vmem [#allocation9], %s759_s4 }
  0xce   : > { %1287 = dma.done.wait (%p1930_p7), %s326_s13, 2048  }
  0xcf   : > { %1289 = vsyncadd (%p1930_p7), %s326_s13, 4294965248  ;;  %p1931_p4 = scmp.eq.s32.totalorder %s1927_s16, 0 }
  0xd1   : > { %1291 = dma.done.wait (%p1931_p4), [#allocation10], 16   ;;  %p1932_p9 = pmov %p1931_p4 }
  0xd2   : > { %s1738_s24 = scalar_lea.vmem [#allocation12], %s758_s9  ;;  %s1933_s12 = sld [smem:[#allocation21_spill]] }
  0xd3   : > { %1293 = vsyncadd (%p1932_p9), [#allocation10], 4294967280 }
  0xd8   : > { %p763_p10 = scmp.ne.s32.totalorder %s1933_s12, 0 }
  0xd9   : > { %v764_v0 = vld [vmem:[#allocation11] ss:$0 sm:$0xff] (!%p763_p10) }
  0xda   : > { %378 = sbr.rel (%p763_p10) target bundleno = 225 (0xe1), region = 64  ;;  %386 = vst [vmem:[#allocation2] sm:$0xff] (!%p763_p10), %v764_v0 }
  0xe1 PF: > { %v388_v1 = vld [vmem:[%s1720_s17] sm:$0xff]  ;;  %v389_v2 = vld [vmem:[%s1720_s17 + $0x8] sm:$0xff]  ;;  %v390_v3 = vld [vmem:[%s1720_s17 + $0x10] sm:$0xff]  ;;  %v1350_v4 = vmov 0.0|0.0   ;;  %vm1351_vm0 = vmmov 0   ;;  %v1352_v7 = vmov 0.0  }
  0xe2   : > { %876 = vmatprep.subr.bf16.mxu0 %v1350_v4  ;;  %v877_v5 = vpack.c.bf16 %v389_v2, %v388_v1  ;;  %v391_v6 = vld [vmem:[%s1720_s17 + $0x18] sm:$0xff]  ;;  %838 = vmatprep.mubr.msk.f32.mxu0 %vm1351_vm0, %v1352_v7  ;;  %v392_v9 = vld [vmem:[%s1720_s17 + $0x20] sm:$0xff]  ;;  %v393_v10 = vld [vmem:[%s1720_s17 + $0x28] sm:$0xff]  ;;  %s1934_s29 = sld [smem:[#allocation21_spill]] }
  0xe3   : > { %900 = vmatprep.subr.bf16.mxu1 %v1350_v4  ;;  %873 = vmatprep.mubr.msk.f32.mxu1 %vm1351_vm0, %v1352_v7  ;;  %v880_v8 = vpack.c.bf16 %v391_v6, %v390_v3  ;;  %v483_v11 = vld [vmem:[%s1728_s7] sm:$0xff]  ;;  %v484_v12 = vld [vmem:[%s1728_s7 + $0x8] sm:$0xff]  ;;  %v485_v13 = vld [vmem:[%s1728_s7 + $0x10] sm:$0xff]  ;;  %v883_v15 = vpack.c.bf16 %v393_v10, %v392_v9 }
  0xe4   : > { %878 = vmatpush3.bf16.msra.mxu0 %v877_v5  ;;  %v486_v14 = vld [vmem:[%s1728_s7 + $0x18] sm:$0xff]  ;;  %v901_v16 = vpack.c.bf16 %v484_v12, %v483_v11  ;;  %v394_v17 = vld [vmem:[%s1720_s17 + $0x30] sm:$0xff]  ;;  %v487_v20 = vld [vmem:[%s1728_s7 + $0x20] sm:$0xff] }
  0xe5   : > { %879 = vmatprep.subr.bf16.mxu0 %v1350_v4  ;;  %v395_v18 = vld [vmem:[%s1720_s17 + $0x38] sm:$0xff]  ;;  %v904_v19 = vpack.c.bf16 %v486_v14, %v485_v13  ;;  %v488_v21 = vld [vmem:[%s1728_s7 + $0x28] sm:$0xff]  ;;  %v396_v23 = vld [vmem:[%s1720_s17 + $0x40] sm:$0xff] }
  0xe6   : > { %902 = vmatpush3.bf16.msra.mxu1 %v901_v16  ;;  %v886_v22 = vpack.c.bf16 %v395_v18, %v394_v17  ;;  %v397_v24 = vld [vmem:[%s1720_s17 + $0x48] sm:$0xff]  ;;  %v907_v25 = vpack.c.bf16 %v488_v21, %v487_v20  ;;  %v489_v26 = vld [vmem:[%s1728_s7 + $0x30] sm:$0xff]  ;;  %v490_v27 = vld [vmem:[%s1728_s7 + $0x38] sm:$0xff] }
  0xe7   : > { %903 = vmatprep.subr.bf16.mxu1 %v1350_v4  ;;  %v889_v28 = vpack.c.bf16 %v397_v24, %v396_v23  ;;  %v398_v29 = vld [vmem:[%s1720_s17 + $0x50] sm:$0xff]  ;;  %v399_v30 = vld [vmem:[%s1720_s17 + $0x58] sm:$0xff]  ;;  %v910_v31 = vpack.c.bf16 %v490_v27, %v489_v26  ;;  %v491_v32 = vld [vmem:[%s1728_s7 + $0x40] sm:$0xff] }
  0xe8   : > { %881 = vmatpush3.bf16.msra.mxu0 %v880_v8  ;;  %v492_v33 = vld [vmem:[%s1728_s7 + $0x48] sm:$0xff]  ;;  %v892_v34 = vpack.c.bf16 %v399_v30, %v398_v29  ;;  %v400_v35 = vld [vmem:[%s1720_s17 + $0x60] sm:$0xff]  ;;  %v493_v38 = vld [vmem:[%s1728_s7 + $0x50] sm:$0xff]  ;;  %p766_p11 = scmp.ne.s32.totalorder %s1934_s29, 1 }
  0xe9   : > { %882 = vmatprep.subr.bf16.mxu0 %v1350_v4  ;;  %v401_v36 = vld [vmem:[%s1720_s17 + $0x68] sm:$0xff]  ;;  %v913_v37 = vpack.c.bf16 %v492_v33, %v491_v32  ;;  %v494_v39 = vld [vmem:[%s1728_s7 + $0x58] sm:$0xff]  ;;  %v402_v41 = vld [vmem:[%s1720_s17 + $0x70] sm:$0xff] }
  0xea   : > { %905 = vmatpush3.bf16.msra.mxu1 %v904_v19  ;;  %v895_v40 = vpack.c.bf16 %v401_v36, %v400_v35  ;;  %v403_v42 = vld [vmem:[%s1720_s17 + $0x78] sm:$0xff]  ;;  %v916_v43 = vpack.c.bf16 %v494_v39, %v493_v38  ;;  %v495_v44 = vld [vmem:[%s1728_s7 + $0x60] sm:$0xff]  ;;  %v496_v45 = vld [vmem:[%s1728_s7 + $0x68] sm:$0xff] }
  0xeb   : > { %906 = vmatprep.subr.bf16.mxu1 %v1350_v4  ;;  %v898_v46 = vpack.c.bf16 %v403_v42, %v402_v41  ;;  %v919_v47 = vpack.c.bf16 %v496_v45, %v495_v44  ;;  %v387_v48 = vld [vmem:[%s1712_s25] sm:$0xff]  ;;  %v765_v52 = vld [vmem:[%s1726_s30] ss:$0 sm:$0xff] }
  0xec   : > { %884 = vmatpush3.bf16.msra.mxu0 %v883_v15  ;;  %v497_v49 = vld [vmem:[%s1728_s7 + $0x70] sm:$0xff]  ;;  %v498_v50 = vld [vmem:[%s1728_s7 + $0x78] sm:$0xff]  ;;  %v482_v57 = vld [vmem:[#allocation2] sm:$0xff] }
  0xed   : > { %885 = vmatprep.subr.bf16.mxu0 %v1350_v4  ;;  %v922_v51 = vpack.c.bf16 %v498_v50, %v497_v49 }
  0xee   : > { %908 = vmatpush3.bf16.msra.mxu1 %v907_v25 }
  0xef   : > { %909 = vmatprep.subr.bf16.mxu1 %v1350_v4 }
  0xf0   : > { %887 = vmatpush3.bf16.msra.mxu0 %v886_v22 }
  0xf1   : > { %888 = vmatprep.subr.bf16.mxu0 %v1350_v4 }
  0xf2   : > { %911 = vmatpush3.bf16.msra.mxu1 %v910_v31 }
  0xf3   : > { %912 = vmatprep.subr.bf16.mxu1 %v1350_v4 }
  0xf4   : > { %890 = vmatpush3.bf16.msra.mxu0 %v889_v28 }
  0xf5   : > { %891 = vmatprep.subr.bf16.mxu0 %v1350_v4 }
  0xf6   : > { %914 = vmatpush3.bf16.msra.mxu1 %v913_v37 }
  0xf7   : > { %915 = vmatprep.subr.bf16.mxu1 %v1350_v4 }
  0xf8   : > { %893 = vmatpush3.bf16.msra.mxu0 %v892_v34 }
  0xf9   : > { %894 = vmatprep.subr.bf16.mxu0 %v1350_v4 }
  0xfa   : > { %917 = vmatpush3.bf16.msra.mxu1 %v916_v43 }
  0xfb   : > { %918 = vmatprep.subr.bf16.mxu1 %v1350_v4 }
  0xfc   : > { %896 = vmatpush3.bf16.msra.mxu0 %v895_v40 }
  0xfd   : > { %897 = vmatprep.subr.bf16.mxu0 %v1350_v4 }
  0xfe   : > { %920 = vmatpush3.bf16.msra.mxu1 %v919_v47 }
  0xff   : > { %921 = vmatprep.subr.bf16.mxu1 %v1350_v4 }
 0x100   : > { %899 = vmatpush3.bf16.msra.mxu0 %v898_v46 }
 0x102   : > { %923 = vmatpush3.bf16.msra.mxu1 %v922_v51 }
 0x103   : > { %839 = vmatmul.mubr.f32.vlgmr.msra.gmra.mrb[0].mxu0 %v387_v48 }
 0x1d6   : > { %v477_v53 = vpop.f32.mrb[0].mxu0 }
 0x1d7   : > { %v478_v54 = vadd.f32 %v765_v52, %v477_v53  ;;  %v840_v55 = vpop.f32.mrb[1].mxu0 }
 0x1d9   : > { %v481_v56 = vmax.f32 %v478_v54, 0.0 }
 0x1db   : > { %874 = vmatmul.mubr.f32.vlgmr.msra.gmra.mrb[0].mxu1 %v481_v56 }
 0x2ab   : > { %574 = sbr.rel (%p766_p11) target bundleno = 698 (0x2ba), region = 68 }
 0x2ae   : > { %v565_v58 = vpop.f32.mrb[0].mxu1 }
 0x2af   : > { %v569_v59 = vadd.f32 %v565_v58, %v482_v57  ;;  %v875_v60 = vpop.f32.mrb[1].mxu1 }
 0x2b1   : > { %570 = vst [vmem:[#allocation2] sm:$0xff] %v569_v59 }
 0x2b8   : > { %v575_v61 = vld [vmem:[#allocation2] sm:$0xff] }
 0x2b9   : > { %576 = vst [vmem:[%s1738_s24] sm:$0xff] %v575_v61 }
 0x2ba PF: > { %s1935_s10 = sld [smem:[#allocation22_spill]]  ;;  %s1936_s9 = sld [smem:[#allocation32_spill]] }
 0x2bb   : > { %s591_s25 = sshll.u32 %s1738_s24, 4  ;;  %s578_s16 = scalar_lea.sflag [#allocation5], %s1708_s14  ;;  %s592_s25 = int_to_ptr.vmem [resolvable:$true] %s591_s25 }
 0x2bc   : > { %s1206_s23 = scalar_lea.vmem %s592_s25, 128  ;;  %p1937_p1 = scmp.ne.s32.totalorder %s1913_s6, 0 }
 0x2bd   : > { %p1207_p8 = scmp.ne.s32.totalorder %s592_s25, %s1206_s23  ;;  %s1353_s19 = smov [#allocation12]  }
 0x2be   : > { %s1210_s11 = sshll.u32 %s1353_s19, 4  ;;  %s1211_s11 = int_to_ptr.vmem [resolvable:$false] %s1210_s11 }
 0x2bf   : > { %p1208_p3 = pnand %p1207_p8, %p1937_p1  ;;  %s1212_s15 = scalar_lea.vmem %s1211_s11, 256 }
 0x2c0   : > { %s768_s1 = sshll.u32 %s1935_s10, 7  ;;  %p1213_p0 = scmp.lt.s32.totalorder %s592_s25, %s1211_s11 }
 0x2c1   : > { %s1797_s5 = scalar_lea.hbm %s1936_s9, %s768_s1  ;;  %p1209_p2 = pneg %p1208_p3 }
 0x2c2   : > { %p1214_p13 = scmp.lt.s32.totalorder %s1212_s15, %s1206_s23 }
 0x2c4   : > { %p1215_p12 = por %p1214_p13, %p1213_p0 }
 0x2c6   : > { %p1216_p5 = pnand %p1215_p12, %p1209_p2 }
 0x2c8   : > { %1219 = shalt.err (!%p1216_p5)
}
 0x2c9   : > { %s1220_s14 = scalar_lea.hbm %s1797_s5, 128  ;;  %s1224_s17 = scalar_lea.hbm %s1936_s9, 256 }
 0x2ca   : > { %p1221_p6 = scmp.ne.s32.totalorder %s1797_s5, %s1220_s14  ;;  %p1225_p9 = scmp.lt.u32.totalorder %s1797_s5, %s1936_s9 }
 0x2cb   : > { %p1226_p10 = scmp.lt.u32.totalorder %s1224_s17, %s1220_s14  ;;  %p1228_p8 = scmp.lt.u32.totalorder %s1220_s14, %s1797_s5 }
 0x2cc   : > { %p1222_p7 = pnand %p1221_p6, %p1937_p1 }
 0x2cd   : > { %p1227_p11 = por %p1226_p10, %p1225_p9 }
 0x2ce   : > { %p1223_p4 = pneg %p1222_p7 }
 0x2cf   : > { %p1229_p3 = por %p1228_p8, %p1227_p11 }
 0x2d1   : > { %p1230_p2 = pnand %p1229_p3, %p1223_p4 }
 0x2d3   : > { %1233 = shalt.err (!%p1230_p2)
}
 0x2d4   : > { %936 = dma.vmem_to_hbm [thread:$0]  (%p1937_p1), %s592_s25, 128, %s1797_s5, %s578_s16  }
 0x2d5 PF: > { %s1938_s7 = sld [smem:[#allocation19_spill]]  ;;  %s1939_s24 = sld [smem:[#allocation26_spill]] }
 0x2d6   : > { %p962_p0 = scmp.ge.s32.totalorder %s1340_s28, 2 }
 0x2db   : > { %s603_s12 = sand.u32 1, %s1938_s7   ;;  %p1940_p13 = scmp.ne.s32.totalorder %s1939_s24, 0 }
 0x2dc   : > { %s604_s29 = scalar_lea.sflag [#allocation5], %s603_s12 }
 0x2dd   : > { %p956_p12 = pnand %p962_p0, %p1940_p13 }
 0x2df   : > { %1295 = dma.done.wait (!%p956_p12), %s604_s29, 128  }
 0x2e0   : > { %1297 = vsyncadd (!%p956_p12), %s604_s29, 4294967168  ;;  %s27_s28 = sadd.s32 1, %s1340_s28   ;;  %s1941_s18 = sld [smem:[#allocation18_spill]] }
 0x2e1   : > { %p24_p5 = scmp.ge.s32.totalorder %s27_s28, 6   ;;  %s1942_s6 = sld [smem:[#allocation20_spill]] }
 0x2e2   : > { %s1943_s23 = sld [smem:[#allocation29_spill]]  ;;  %s1944_s25 = sld [smem:[#allocation23_spill]] }
 0x2e3   : > { %s1945_s10 = sld [smem:[#allocation27_spill]]  ;;  %s1946_s27 = sld [smem:[#allocation28_spill]] }
 0x2e4   : > { %s1947_s19 = smov %s1308_s20  ;;  %s1948_s20 = smov %s1588_s8 }
 0x2e5   : > { %s1949_s21 = smov %s1316_s22  ;;  %s1951_s24 = smov %s1332_s26 }
 0x2e6   :  { %26 = sbr.rel (!%p24_p5) target bundleno = 17 (0x11), region = 134 }
 0x2e7   : > { %s1950_s22 = smov %s1942_s6 }
 0x2e9   : > { %s1952_s26 = smov %s1945_s10 }
 0x2ed   :  { %609 = vsyncpa [#allocation4], 1 }
 0x2ee   :  { %611 = vsyncpa [#allocation4 + $0x1], 1 }
 0x2ef   :  { %612 = vsyncpa [#allocation7], 1 }
 0x2f0   :  { %614 = vsyncpa [#allocation7 + $0x1], 1 }
 0x2f1   :  { %615 = vsyncpa [#allocation10], 1 }
 0x2f2   :  { %617 = vsyncpa [#allocation10 + $0x1], 1 }
 0x2f3   :  { %618 = vsyncpa [#allocation5], 1 }
 0x2f4   :  { %620 = vsyncpa [#allocation5 + $0x1], 1 }

</bundles_post_ra>
